<compile_context>
chip_gen: v7x
topology: tpu7x:2x2x1
jax: 0.10.0
libtpu: 0.0.40
codegen_flags: <defaults>
</compile_context>

<pallas_src>
import functools

import jax
import jax.numpy as jnp
from jax import lax
from jax.experimental import pallas as pl
from jax.experimental.pallas import tpu as pltpu

_NEG = -1e30   # finite "-inf" for masked (padded) logit columns
_SUB = 16      # bf16-native sublane multiple for row tiles


def _round_up(x, m):
    return ((x + m - 1) // m) * m


def _vmem_capacity_bytes():
    """Per-TensorCore VMEM capacity; conservative v7x default if unqueryable."""
    try:
        cap = getattr(pltpu.get_tpu_info(), "vmem_capacity_bytes", None)
        if cap:
            return int(cap)
    except Exception:
        pass
    return 64 * 1024 * 1024


# ---------------------------------------------------------------------------
# Phase 1: row-tiled projection  (pooled hidden @ W_proj -> embeddings, bf16)
# ---------------------------------------------------------------------------
def _project_kernel(inv_t_ref, h_ref, w_ref, out_ref, *, apply_temp):
    """[tb, H] @ [H, D] in f32 on the MXU; output rounded to bf16.

    For the text tower the CLIP temperature 1/clamp(exp(log_t), min_t) is folded
    into the embeddings here (O(B*D)) instead of scaling the B x B logits."""
    e = jnp.dot(h_ref[...], w_ref[...], preferred_element_type=jnp.float32)
    if apply_temp:
        e = e * inv_t_ref[0]
    out_ref[...] = e.astype(out_ref.dtype)


def _project(hidden, w, inv_t, tb, apply_temp):
    Bp, Hp = hidden.shape
    Dp = w.shape[1]
    return pl.pallas_call(
        functools.partial(_project_kernel, apply_temp=apply_temp),
        out_shape=jax.ShapeDtypeStruct((Bp, Dp), jnp.bfloat16),
        grid=(Bp // tb,),
        in_specs=[
            pl.BlockSpec(memory_space=pltpu.MemorySpace.SMEM),   # 1/temp scalar
            pl.BlockSpec((tb, Hp), lambda i: (i, 0)),            # hidden row tile
            pl.BlockSpec((Hp, Dp), lambda i: (0, 0)),            # weight (loaded once)
        ],
        out_specs=pl.BlockSpec((tb, Dp), lambda i: (i, 0)),
        compiler_params=pltpu.CompilerParams(
            dimension_semantics=("parallel",),
            vmem_limit_bytes=32 * 1024 * 1024),
    )(inv_t, hidden, w)


# ---------------------------------------------------------------------------
# Phase 2a: image embeddings resident in VMEM (one HBM load), single-pass LSE
# ---------------------------------------------------------------------------
def _loss_resident_kernel(txt_ref, img_ref, out_ref, *, n_valid, mask_cols):
    i = pl.program_id(0)
    tb = txt_ref.shape[0]
    txt = txt_ref[...]                                            # [tb, D]  bf16
    # Logits slab for this row tile: [tb, B_p]; bf16 MXU inputs, f32 accumulate.
    s = lax.dot_general(txt, img_ref[...], (((1,), (1,)), ((), ())),
                        preferred_element_type=jnp.float32)
    if mask_cols:  # only emitted when padded image columns exist (trace-time)
        col = lax.broadcasted_iota(jnp.int32, s.shape, 1)
        s = jnp.where(col < n_valid, s, _NEG)
    m = jnp.max(s, axis=-1, keepdims=True)
    l = jnp.sum(jnp.exp(s - m), axis=-1, keepdims=True)
    # Diagonal logits[r, r]: row-wise dot with the matching image rows (f32).
    start = pl.multiple_of(i * tb, tb)
    img_d = img_ref[pl.ds(start, tb), :]
    d = jnp.sum(txt.astype(jnp.float32) * img_d.astype(jnp.float32),
                axis=-1, keepdims=True)
    out_ref[...] = m + jnp.log(l) - d


# ---------------------------------------------------------------------------
# Phase 2b fallback: (row, col)-tiled online logsumexp (img_e too big for VMEM)
# ---------------------------------------------------------------------------
def _loss_tiled_kernel(txt_ref, img_ref, out_ref, m_sc, l_sc, d_sc, *,
                       n_valid, mask_cols):
    i = pl.program_id(0)        # logits-row (text) tile   -- "parallel"
    j = pl.program_id(1)        # logits-col (image) tile  -- reduction

    @pl.when(j == 0)
    def _():
        m_sc[...] = jnp.full(m_sc.shape, -jnp.inf, jnp.float32)
        l_sc[...] = jnp.zeros(l_sc.shape, jnp.float32)
        d_sc[...] = jnp.zeros(d_sc.shape, jnp.float32)

    txt = txt_ref[...]
    img = img_ref[...]
    s = lax.dot_general(txt, img, (((1,), (1,)), ((), ())),
                        preferred_element_type=jnp.float32)        # [tb, tb]
    if mask_cols:
        # TODO(synk): could be narrowed to the last column tile via lax.cond.
        col = j * s.shape[1] + lax.broadcasted_iota(jnp.int32, s.shape, 1)
        s = jnp.where(col < n_valid, s, _NEG)

    m_new = jnp.maximum(m_sc[...], jnp.max(s, axis=-1, keepdims=True))
    alpha = jnp.exp(m_sc[...] - m_new)
    l_sc[...] = alpha * l_sc[...] + jnp.sum(jnp.exp(s - m_new), axis=-1, keepdims=True)
    m_sc[...] = m_new

    # Diagonal lives only in column tile j == i: cheap row-wise dot (f32).
    @pl.when(i == j)
    def _():
        d_sc[...] = jnp.sum(txt.astype(jnp.float32) * img.astype(jnp.float32),
                            axis=-1, keepdims=True)

    @pl.when(j == pl.num_programs(1) - 1)
    def _():
        out_ref[...] = m_sc[...] + jnp.log(l_sc[...]) - d_sc[...]


def _resident_vmem_bytes(B_p, D_p, tb):
    img = 2 * B_p * D_p * 2      # resident image embeds, bf16, default double-buffer
    txt = 2 * tb * D_p * 2       # text row tile, bf16, double-buffered
    out = 2 * tb * 4
    slab = 2 * tb * B_p * 4      # [tb, B_p] f32 logits + exp intermediates
    return img + txt + out + slab + (4 << 20)   # headroom for spills / misc


# ---------------------------------------------------------------------------
# Wrapper: scalar CLIP loss = cross_entropy(text @ image.T / temp, arange(B))
# ---------------------------------------------------------------------------
def clip_loss(img_hidden, txt_hidden, w_vis, w_txt, log_t, min_t, *,
              row_tile=256, force_tiled=False):
    B, H_img = img_hidden.shape
    _, H_txt = txt_hidden.shape
    D = w_vis.shape[1]

    # Lane-dense padding: feature dims -> multiples of 128; batch -> multiple of
    # the row tile (bf16-native multiple of 16).  row_tile=256 on all generations.
    H_img_p = _round_up(H_img, 128)
    H_txt_p = _round_up(H_txt, 128)
    D_p = _round_up(D, 128)
    tb = max(_SUB, _round_up(min(row_tile, _round_up(B, _SUB)), _SUB))
    # v7x has two TensorCores: if the batch would give a single row tile, halve
    # the tile so the "parallel" axis can shard across both cores.
    if _round_up(B, tb) // tb < 2 and tb > _SUB:
        tb = max(_SUB, _round_up(tb // 2, _SUB))
    B_p = _round_up(B, tb)
    n_tiles = B_p // tb
    mask_cols = B_p != B     # padded image columns exist -> mask inside phase 2

    f32 = jnp.float32
    img_h = jnp.zeros((B_p, H_img_p), f32).at[:B, :H_img].set(img_hidden.astype(f32))
    txt_h = jnp.zeros((B_p, H_txt_p), f32).at[:B, :H_txt].set(txt_hidden.astype(f32))
    wv = jnp.zeros((H_img_p, D_p), f32).at[:H_img, :D].set(w_vis.astype(f32))
    wt = jnp.zeros((H_txt_p, D_p), f32).at[:H_txt, :D].set(w_txt.astype(f32))

    # Scalar temperature (3 flops) prepared outside; the actual fold into the
    # text embeddings happens inside the projection kernel.
    inv_t = (1.0 / jnp.maximum(jnp.exp(jnp.asarray(log_t, f32)),
                               jnp.asarray(min_t, f32))).reshape((1,))
    one = jnp.ones((1,), f32)

    # Phase 1: embeddings computed exactly once per row tile, emitted in bf16.
    img_e = _project(img_h, wv, one, tb, apply_temp=False)
    txt_e = _project(txt_h, wt, inv_t, tb, apply_temp=True)

    # Phase 2: per-row (logsumexp over image columns  -  diagonal logit).
    cap = _vmem_capacity_bytes()
    budget = int(cap * 0.7)
    use_resident = (not force_tiled) and _resident_vmem_bytes(B_p, D_p, tb) <= budget

    if use_resident:
        per_row = pl.pallas_call(
            functools.partial(_loss_resident_kernel, n_valid=B, mask_cols=mask_cols),
            out_shape=jax.ShapeDtypeStruct((B_p, 1), f32),
            grid=(n_tiles,),
            in_specs=[
                pl.BlockSpec((tb, D_p), lambda i: (i, 0)),    # text rows (streamed)
                pl.BlockSpec((B_p, D_p), lambda i: (0, 0)),   # image embeds (resident;
                                                              #  HBM load happens once)
            ],
            out_specs=pl.BlockSpec((tb, 1), lambda i: (i, 0)),
            compiler_params=pltpu.CompilerParams(
                dimension_semantics=("parallel",),
                vmem_limit_bytes=max(budget, 32 * 1024 * 1024)),
        )(txt_e, img_e)
    else:
        per_row = pl.pallas_call(
            functools.partial(_loss_tiled_kernel, n_valid=B, mask_cols=mask_cols),
            out_shape=jax.ShapeDtypeStruct((B_p, 1), f32),
            grid=(n_tiles, n_tiles),
            in_specs=[
                pl.BlockSpec((tb, D_p), lambda i, j: (i, 0)),   # text tile (rows)
                pl.BlockSpec((tb, D_p), lambda i, j: (j, 0)),   # image tile (cols)
            ],
            out_specs=pl.BlockSpec((tb, 1), lambda i, j: (i, 0)),
            scratch_shapes=[pltpu.VMEM((tb, 1), f32),
                            pltpu.VMEM((tb, 1), f32),
                            pltpu.VMEM((tb, 1), f32)],
            compiler_params=pltpu.CompilerParams(
                dimension_semantics=("parallel", "arbitrary"),
                vmem_limit_bytes=32 * 1024 * 1024),
        )(txt_e, img_e)

    # Padded rows (>= B) are excluded from the mean here.
    return jnp.sum(per_row[:B, 0]) / B


# ---------------------------------------------------------------------------
# Pure-JAX f32 reference and tests
# ---------------------------------------------------------------------------
def _reference(img_hidden, txt_hidden, w_vis, w_txt, log_t, min_t):
    hp = lax.Precision.HIGHEST
    img_e = jnp.dot(img_hidden, w_vis, precision=hp)
    txt_e = jnp.dot(txt_hidden, w_txt, precision=hp)
    temp = jnp.maximum(jnp.exp(log_t), min_t)
    logits = jnp.dot(txt_e, img_e.T, precision=hp) / temp
    n = logits.shape[0]
    logp = jax.nn.log_softmax(logits, axis=-1)
    return -jnp.mean(logp[jnp.arange(n), jnp.arange(n)])


def _run_case(key, B, H_IMG, H_TXT, D, min_t=0.01, force_tiled=False):
    k1, k2, k3, k4 = jax.random.split(key, 4)
    img_hidden = jax.random.normal(k1, (B, H_IMG), dtype=jnp.float32)
    txt_hidden = jax.random.normal(k2, (B, H_TXT), dtype=jnp.float32)
    w_vis = jax.random.normal(k3, (H_IMG, D), dtype=jnp.float32) * 0.02
    w_txt = jax.random.normal(k4, (H_TXT, D), dtype=jnp.float32) * 0.02
    log_t = jnp.log(jnp.float32(0.07))     # model.log_t
    min_t = jnp.float32(min_t)             # model.min_t

    loss = jax.block_until_ready(
        clip_loss(img_hidden, txt_hidden, w_vis, w_txt, log_t, min_t,
                  force_tiled=force_tiled))
    ref = _reference(img_hidden, txt_hidden, w_vis, w_txt, log_t, min_t)
    assert jnp.isfinite(loss), loss
    # bf16 phase-2 matmul vs f32 reference -> tolerance relaxed accordingly.
    assert jnp.allclose(loss, ref, rtol=2e-2, atol=3e-2), (loss, ref)


if __name__ == "__main__":
    key = jax.random.PRNGKey(0)
    keys = jax.random.split(key, 4)
    # resident path, padded batch rows/cols
    _run_case(keys[0], B=8, H_IMG=64, H_TXT=32, D=32)
    # resident path, no padding (B multiple of the tile)
    _run_case(keys[1], B=16, H_IMG=32, H_TXT=32, D=64)
    # resident path, non-multiple batch + active temperature clamp
    _run_case(keys[2], B=5, H_IMG=40, H_TXT=24, D=24, min_t=0.5)
    # forced tiled fallback (2x2 grid): exercises the online-logsumexp kernel
    _run_case(keys[3], B=40, H_IMG=64, H_TXT=48, D=32, force_tiled=True)
    print("KERNEL_OK")
</pallas_src>

<mosaic_0001>
module attributes {stable_mosaic.version = 11 : i64} {
  func.func @_project_kernel(%arg0: i32, %arg1: memref<1xf32, #tpu.memory_space<smem>>, %arg2: memref<16x128xf32, #tpu.memory_space<vmem>>, %arg3: memref<128x128xf32, #tpu.memory_space<vmem>>, %arg4: memref<16x128xbf16, #tpu.memory_space<vmem>>) attributes {dimension_semantics = [#tpu.dimension_semantics<parallel>], iteration_bounds = array<i64: 1>, scalar_prefetch = 0 : i64, scratch_operands = 0 : i64, tpu.core_type = #tpu.core_type<tc>, window_params = [{transform_indices = @transform_0, window_bounds = array<i64: 1>}, {transform_indices = @transform_1, window_bounds = array<i64: 16, 128>}, {pipeline_mode = #tpu.pipeline_mode<synchronous>, transform_indices = @transform_2, window_bounds = array<i64: 128, 128>}, {transform_indices = @transform_3, window_bounds = array<i64: 16, 128>}]} {
    %c0 = arith.constant 0 : index
    %c0_0 = arith.constant 0 : index
    %0 = vector.load %arg2[%c0, %c0_0] : memref<16x128xf32, #tpu.memory_space<vmem>>, vector<16x128xf32>
    %c0_1 = arith.constant 0 : index
    %c0_2 = arith.constant 0 : index
    %1 = vector.load %arg3[%c0_1, %c0_2] : memref<128x128xf32, #tpu.memory_space<vmem>>, vector<128x128xf32>
    %cst = arith.constant dense<0.000000e+00> : vector<16x128xf32>
    %2 = tpu.matmul %0, %1, %cst {dimension_numbers = #tpu.dot_dimension_numbers<[1], [0], [0], [1], [0, 0, 1, 1], [], []>} : vector<16x128xf32>, vector<128x128xf32>, vector<16x128xf32> -> vector<16x128xf32>
    %3 = arith.truncf %2 : vector<16x128xf32> to vector<16x128xbf16>
    %c0_3 = arith.constant 0 : index
    %c0_4 = arith.constant 0 : index
    %4 = vector.load %arg4[%c0_3, %c0_4] : memref<16x128xbf16, #tpu.memory_space<vmem>>, vector<16x128xbf16>
    tpu.vector_store %arg4[%c0_3, %c0_4], %3 {strides = array<i32>} : memref<16x128xbf16, #tpu.memory_space<vmem>>, vector<16x128xbf16>,
    return
  }
  func.func @transform_0(%arg0: i32) -> i32 {
    %c0_i32 = arith.constant 0 : i32
    %c0_i32_0 = arith.constant 0 : i32
    return %c0_i32 : i32
  }
  func.func @transform_1(%arg0: i32) -> (i32, i32) {
    %c0_i32 = arith.constant 0 : i32
    %c0_i32_0 = arith.constant 0 : i32
    return %arg0, %c0_i32 : i32, i32
  }
  func.func @transform_2(%arg0: i32) -> (i32, i32) {
    %c0_i32 = arith.constant 0 : i32
    %c0_i32_0 = arith.constant 0 : i32
    %c0_i32_1 = arith.constant 0 : i32
    return %c0_i32, %c0_i32_0 : i32, i32
  }
  func.func @transform_3(%arg0: i32) -> (i32, i32) {
    %c0_i32 = arith.constant 0 : i32
    %c0_i32_0 = arith.constant 0 : i32
    return %arg0, %c0_i32 : i32, i32
  }
}

</mosaic_0001>

<bundles_post_ra>
// kernel: tpu_custom_call.1
= control target key start
LH: loop header
LB: loop body
LE: loop exit
PB: predicated region body
PF: predicated region fallthrough
CT: control target
= control target key end

     0   :  { %9 = vsyncpa [#allocation4], 0  ;;  %s401_s0 = inlined_call_operand.<no memory space> [shape: f32[1], index: 0, kind: input, shape index: {}]   ;;  %s402_s1 = inlined_call_operand.hbm [shape: f32[16,128], index: 1, kind: input, shape index: {}]   ;;  %s403_s2 = inlined_call_operand.hbm [shape: f32[128,128], index: 2, kind: input, shape index: {}]   ;;  %s404_s3 = inlined_call_operand.hbm [shape: bf16[16,128], index: 3, kind: output, shape index: {}]  }
   0x1   :  { %10 = vsyncpa [#allocation7], 0 }
   0x2   :  { %11 = vsyncpa [#allocation5], 0  ;;  %s338_s12 = smov [#allocation3]   ;;  %s266_s16 = scalar_lea.hbm %s402_s1, 256 }
   0x3   :  { %s19_s13 = sshll.u32 %s338_s12, 4  ;;  %p267_p0 = scmp.ne.s32.totalorder %s402_s1, %s266_s16  ;;  %s20_s13 = int_to_ptr.vmem [resolvable:$true] %s19_s13 }
   0x4   :  { %p270_p1 = scmp.lt.u32.totalorder %s266_s16, %s402_s1 }
   0x6   :  { %p272_p2 = pnand %p270_p1, %p267_p0 }
   0x8   :  { %275 = shalt.err (!%p272_p2)
}
   0x9   :  { %s276_s20 = scalar_lea.vmem %s20_s13, 256  ;;  %p281_p4 = scmp.lt.s32.totalorder %s20_s13, %s20_s13 }
   0xa   :  { %p277_p3 = scmp.ne.s32.totalorder %s20_s13, %s276_s20  ;;  %p282_p5 = scmp.lt.s32.totalorder %s276_s20, %s276_s20 }
   0xc   :  { %p283_p6 = por %p282_p5, %p281_p4 }
   0xe   :  { %p284_p7 = pnand %p283_p6, %p277_p3 }
  0x10   :  { %287 = shalt.err (!%p284_p7)
}
  0x11   :  { %s339_s21 = smov 128   ;;  %s340_s22 = smov 8  }
  0x12   :  { %25 = dma.hbm_to_vmem [thread:$0]  %s402_s1, 256, %s20_s13, [#allocation4], %s339_s21, %s339_s21, %s340_s22  }
  0x13   :  { %s341_s25 = smov [#allocation6]   ;;  %s288_s29 = scalar_lea.hbm %s403_s2, 2048 }
  0x14   :  { %s31_s26 = sshll.u32 %s341_s25, 4  ;;  %p289_p8 = scmp.ne.s32.totalorder %s403_s2, %s288_s29  ;;  %s32_s26 = int_to_ptr.vmem [resolvable:$true] %s31_s26 }
  0x15   :  { %p292_p9 = scmp.lt.u32.totalorder %s288_s29, %s403_s2 }
  0x17   :  { %p294_p10 = pnand %p292_p9, %p289_p8 }
  0x19   :  { %297 = shalt.err (!%p294_p10)
}
  0x1a   :  { %s298_s7 = scalar_lea.vmem %s32_s26, 2048  ;;  %p303_p12 = scmp.lt.s32.totalorder %s32_s26, %s32_s26 }
  0x1b   :  { %p299_p11 = scmp.ne.s32.totalorder %s32_s26, %s298_s7  ;;  %p304_p13 = scmp.lt.s32.totalorder %s298_s7, %s298_s7 }
  0x1d   :  { %p305_p0 = por %p304_p13, %p303_p12 }
  0x1f   :  { %p306_p1 = pnand %p305_p0, %p299_p11 }
  0x21   :  { %309 = shalt.err (!%p306_p1)
}
  0x22   :  { %37 = dma.hbm_to_vmem [thread:$0]  %s403_s2, 2048, %s32_s26, [#allocation7], %s339_s21, %s339_s21, %s340_s22  }
  0x23   :  { %332 = dma.done.wait [#allocation4], 256  }
  0x24   :  { %333 = vsyncadd [#allocation4], 4294967040 }
  0x25   :  { %334 = dma.done.wait [#allocation7], 2048  }
  0x26   :  { %335 = vsyncadd [#allocation7], 4294965248  ;;  %v46_v0 = vld [vmem:[#allocation6] sm:$0xff]  ;;  %v47_v1 = vld [vmem:[#allocation6 + $0x8] sm:$0xff]  ;;  %s342_s2 = smov [#allocation8]  }
  0x27   :  { %v48_v2 = vld [vmem:[#allocation6 + $0x10] sm:$0xff]  ;;  %v227_v3 = vpack.c.bf16 %v47_v1, %v46_v0  ;;  %v49_v4 = vld [vmem:[#allocation6 + $0x18] sm:$0xff]  ;;  %v50_v6 = vld [vmem:[#allocation6 + $0x20] sm:$0xff]  ;;  %s152_s9 = sshll.u32 %s342_s2, 4  ;;  %s153_s9 = int_to_ptr.vmem [resolvable:$true] %s152_s9 }
  0x28   :  { %v231_v5 = vpack.c.bf16 %v49_v4, %v48_v2  ;;  %v51_v7 = vld [vmem:[#allocation6 + $0x28] sm:$0xff]  ;;  %v44_v9 = vld [vmem:[#allocation3] sm:$0xff]  ;;  %v53_v11 = vld [vmem:[#allocation6 + $0x38] sm:$0xff]  ;;  %s310_s10 = scalar_lea.vmem %s153_s9, 128  ;;  %p315_p3 = scmp.lt.s32.totalorder %s153_s9, %s153_s9 }
  0x29   :  { %228 = vmatprep.subr.bf16.mxu0 %v227_v3  ;;  %v235_v8 = vpack.c.bf16 %v51_v7, %v50_v6  ;;  %v52_v10 = vld [vmem:[#allocation6 + $0x30] sm:$0xff]  ;;  %224 = vmatprep.mubr.f32.mxu0 %v44_v9  ;;  %v54_v13 = vld [vmem:[#allocation6 + $0x40] sm:$0xff]  ;;  %v55_v14 = vld [vmem:[#allocation6 + $0x48] sm:$0xff]  ;;  %p311_p2 = scmp.ne.s32.totalorder %s153_s9, %s310_s10  ;;  %p316_p4 = scmp.lt.s32.totalorder %s310_s10, %s310_s10 }
  0x2a   :  { %230 = vmatpush3.bf16.msra.mxu0 %v227_v3  ;;  %v239_v12 = vpack.c.bf16 %v53_v11, %v52_v10  ;;  %v243_v15 = vpack.c.bf16 %v55_v14, %v54_v13  ;;  %v56_v16 = vld [vmem:[#allocation6 + $0x50] sm:$0xff]  ;;  %v57_v17 = vld [vmem:[#allocation6 + $0x58] sm:$0xff]  ;;  %v58_v19 = vld [vmem:[#allocation6 + $0x60] sm:$0xff] }
  0x2b   :  { %232 = vmatprep.subr.bf16.mxu0 %v231_v5  ;;  %v247_v18 = vpack.c.bf16 %v57_v17, %v56_v16  ;;  %v59_v20 = vld [vmem:[#allocation6 + $0x68] sm:$0xff]  ;;  %v60_v22 = vld [vmem:[#allocation6 + $0x70] sm:$0xff]  ;;  %v61_v23 = vld [vmem:[#allocation6 + $0x78] sm:$0xff]  ;;  %p317_p5 = por %p316_p4, %p315_p3 }
  0x2c   :  { %v251_v21 = vpack.c.bf16 %v59_v20, %v58_v19  ;;  %v255_v24 = vpack.c.bf16 %v61_v23, %v60_v22  ;;  %v45_v25 = vld [vmem:[#allocation3 + $0x8] sm:$0xff] }
  0x2d   :  { %p318_p6 = pnand %p317_p5, %p311_p2 }
  0x2e   :  { %234 = vmatpush3.bf16.msra.mxu0 %v231_v5 }
  0x2f   :  { %236 = vmatprep.subr.bf16.mxu0 %v235_v8 }
  0x32   :  { %238 = vmatpush3.bf16.msra.mxu0 %v235_v8 }
  0x33   :  { %240 = vmatprep.subr.bf16.mxu0 %v239_v12 }
  0x36   :  { %242 = vmatpush3.bf16.msra.mxu0 %v239_v12 }
  0x37   :  { %244 = vmatprep.subr.bf16.mxu0 %v243_v15 }
  0x3a   :  { %246 = vmatpush3.bf16.msra.mxu0 %v243_v15 }
  0x3b   :  { %248 = vmatprep.subr.bf16.mxu0 %v247_v18 }
  0x3e   :  { %250 = vmatpush3.bf16.msra.mxu0 %v247_v18 }
  0x3f   :  { %252 = vmatprep.subr.bf16.mxu0 %v251_v21 }
  0x42   :  { %254 = vmatpush3.bf16.msra.mxu0 %v251_v21 }
  0x43   :  { %256 = vmatprep.subr.bf16.mxu0 %v255_v24 }
  0x46   :  { %258 = vmatpush3.bf16.msra.mxu0 %v255_v24 }
  0x49   :  { %225 = vmatmul.mubr.f32.vlgmr.msra.gmra.mrb[0].mxu0 %v45_v25 }
 0x11c   :  { %v226_v26 = vpop.f32.mrb[0].mxu0 }
 0x11d   :  { %v128_v27 = vpop.f32.mrb[1].mxu0 }
 0x11e   :  { %v172_v28 = vpack.c.bf16 %v226_v26, %v128_v27 }
 0x120   :  { %173 = vst [vmem:[#allocation8] sm:$0xff] %v172_v28  }
 0x121   :  { %321 = shalt.err (!%p318_p6)
}
 0x122   :  { %s322_s13 = scalar_lea.hbm %s404_s3, 128 }
 0x123   :  { %p323_p7 = scmp.ne.s32.totalorder %s404_s3, %s322_s13  ;;  %p326_p8 = scmp.lt.u32.totalorder %s322_s13, %s404_s3 }
 0x125   :  { %p328_p9 = pnand %p326_p8, %p323_p7 }
 0x127   :  { %331 = shalt.err (!%p328_p9)
}
 0x128   :  { %s343_s17 = smov 64   ;;  %s344_s18 = smov 4  }
 0x129   :  { %158 = dma.vmem_to_hbm [thread:$0]  %s153_s9, 128, %s404_s3, [#allocation5], %s343_s17, %s343_s17, %s344_s18  }
 0x12a   :  { %336 = dma.done.wait [#allocation5], 128  }
 0x12b   :  { %337 = vsyncadd [#allocation5], 4294967168 }
 0x12c   :  { %162 = vsyncpa [#allocation4], 1 }
 0x12d   :  { %163 = vsyncpa [#allocation7], 1 }
 0x12e   :  { %164 = vsyncpa [#allocation5], 1 }

</bundles_post_ra>
